<compile_context>
chip_gen: v7x
topology: tpu7x:2x2x1
jax: 0.10.0
libtpu: 0.0.40
codegen_flags: <defaults>
</compile_context>

<pallas_src>
import functools
import math

import jax
import jax.numpy as jnp
import numpy as np
from jax import lax
from jax.experimental import pallas as pl
from jax.experimental.pallas import tpu as pltpu

_LANES = 128
_SUBLANES = 8
_TILE_ELEMS = _LANES * _SUBLANES  # 1024


def _round_up(x, m):
    return ((x + m - 1) // m) * m


def _as_lane_rows(x):
    """Flatten to a lane-dense (rows, 128) view.

    Only pads when numel is not a multiple of 1024 (the pad value is
    irrelevant: kernels mask every element whose flat index >= true count).
    For contiguous NCHW image tensors with typical sizes this is a zero-copy
    reshape.
    """
    flat = x.reshape(-1)
    n = int(flat.shape[0])
    n_pad = _round_up(n, _TILE_ELEMS)
    if n_pad != n:
        # TODO(synk): only the awkward-shape fallback pays this copy; the tail
        # could also be reduced separately to avoid it entirely.
        flat = jnp.pad(flat, (0, n_pad - n))
    return flat.reshape(n_pad // _LANES, _LANES), n


# ----------------------------------------------------------------------------
# Pallas kernels: streamed reductions with lane-dense (8,128) accumulators.
# ----------------------------------------------------------------------------
def _block_mask(total_n, tr, row0):
    """Mask of valid elements in the logical (tr, 128) block starting at row0."""
    rows = row0 + lax.broadcasted_iota(jnp.int32, (tr, _LANES), 0)
    lanes = lax.broadcasted_iota(jnp.int32, (tr, _LANES), 1)
    return rows * _LANES + lanes < total_n


def _sse_kernel(xhat_ref, tgt_ref, acc_ref, *, total_n, tr, bps):
    s = pl.program_id(0)   # parallel split (megacore)
    i = pl.program_id(1)   # streamed reduction axis

    @pl.when(i == 0)
    def _():
        acc_ref[...] = jnp.zeros_like(acc_ref)

    row0 = (s * bps + i) * tr
    mask = _block_mask(total_n, tr, row0)
    d = xhat_ref[...].astype(jnp.float32) - tgt_ref[...].astype(jnp.float32)
    d = jnp.where(mask, d, 0.0)
    # Fold the (tr,128) block onto an (8,128) vreg accumulator with VPU adds;
    # the cross-lane reduction to a scalar happens once, in the wrapper.
    part = (d * d).reshape(tr // _SUBLANES, _SUBLANES, _LANES).sum(
        axis=0, keepdims=True)
    acc_ref[...] += part


def _logsum_kernel(x_ref, acc_ref, *, total_n, tr, bps):
    s = pl.program_id(0)
    i = pl.program_id(1)

    @pl.when(i == 0)
    def _():
        acc_ref[...] = jnp.zeros_like(acc_ref)

    row0 = (s * bps + i) * tr
    mask = _block_mask(total_n, tr, row0)
    v = jnp.where(mask, x_ref[...].astype(jnp.float32), 1.0)  # log(1) = 0
    part = jnp.log(v).reshape(tr // _SUBLANES, _SUBLANES, _LANES).sum(
        axis=0, keepdims=True)
    acc_ref[...] += part


def _streamed_reduce(kernel_body, arrays, total_n, *, tr_max, num_splits=2):
    """Run a streamed reduction kernel over (rows,128)-shaped arrays."""
    rows = arrays[0].shape[0]            # multiple of 8 by construction
    tr = min(tr_max, rows)               # block rows (multiple of 8)
    blocks_total = pl.cdiv(rows, tr)
    num_splits = min(num_splits, blocks_total)
    bps = pl.cdiv(blocks_total, num_splits)   # blocks per split

    def in_map(s, i):
        blk = s * bps + i
        # Clamp the DMA to a valid block; the kernel masks using the
        # *unclamped* logical position, so over-read blocks contribute 0.
        return (jnp.minimum(blk, blocks_total - 1), 0)

    in_spec = pl.BlockSpec((tr, _LANES), in_map)
    out_spec = pl.BlockSpec((1, _SUBLANES, _LANES), lambda s, i: (s, 0, 0))

    kernel = functools.partial(kernel_body, total_n=total_n, tr=tr, bps=bps)
    partials = pl.pallas_call(
        kernel,
        out_shape=jax.ShapeDtypeStruct(
            (num_splits, _SUBLANES, _LANES), jnp.float32),
        grid=(num_splits, bps),
        in_specs=[in_spec] * len(arrays),
        out_specs=out_spec,
        compiler_params=pltpu.CompilerParams(
            dimension_semantics=("parallel", "arbitrary"),
            vmem_limit_bytes=32 * 1024 * 1024,
        ),
    )(*arrays)
    # Tiny final reduction (num_splits * 8 * 128 f32) in plain JAX.
    return jnp.sum(partials)


# ----------------------------------------------------------------------------
# Python wrappers mirroring the PyTorch modules.
# ----------------------------------------------------------------------------
def rate_distortion_loss(output, target, lmbda=0.01):
    N, C, H, W = target.shape                       # NCHW, as in PyTorch
    num_pixels = N * H * W
    total_elems = N * C * H * W                     # nn.MSELoss() mean denom

    y = output['likelihoods']['y']
    z = output['likelihoods']['z']
    x_hat = output['x_hat']

    # Dominant-byte stream: x_hat / target SSE (tiled, double-buffered).
    xh_rows, n_img = _as_lane_rows(x_hat)
    tg_rows, _ = _as_lane_rows(target)
    sse = _streamed_reduce(_sse_kernel, [xh_rows, tg_rows], n_img, tr_max=1024)

    # Small latent log-sums: decoupled tiny streamed reductions.
    y_rows, n_y = _as_lane_rows(y)
    z_rows, n_z = _as_lane_rows(z)
    ylog = _streamed_reduce(_logsum_kernel, [y_rows], n_y, tr_max=2048)
    zlog = _streamed_reduce(_logsum_kernel, [z_rows], n_z, tr_max=2048)

    denom = -math.log(2) * num_pixels
    y_bpp = ylog / denom
    z_bpp = zlog / denom

    out = {}
    out['bpp_loss'] = y_bpp + z_bpp
    # Iterating the tensor over dim 0 and summing per-slice log-sums equals
    # the total log-sum, so these match the PyTorch reference values.
    out['y_bpp_loss'] = y_bpp
    out['z_bpp_loss'] = z_bpp
    out['mse_loss'] = (sse / total_elems) * (255.0 ** 2)
    out['loss'] = lmbda * out['mse_loss'] + out['bpp_loss']
    return out


def spatial_distangle_loss(output, target, lmbda=0.01, alpha=0.5, window_size=4):
    rd = rate_distortion_loss(output, target, lmbda=lmbda)
    latent_norm = output['latent_norm']             # read as in the reference
    del latent_norm, alpha, window_size
    # TODO(synk): the reference forward returns an undefined `out` (upstream
    # bug) and never uses latent_norm / alpha / window_size; return the RD
    # loss dict, which is the only well-defined computation in the module.
    return rd


# ----------------------------------------------------------------------------
# Demo / correctness check.
# ----------------------------------------------------------------------------
if __name__ == "__main__":
    key = jax.random.PRNGKey(0)
    k1, k2, k3, k4, k5 = jax.random.split(key, 5)

    N, C, H, W = 2, 3, 16, 16
    Cl, Hl, Wl = 8, 4, 4

    target = jax.random.uniform(k1, (N, C, H, W), jnp.float32)
    x_hat = jax.random.uniform(k2, (N, C, H, W), jnp.float32)
    y_lik = jax.random.uniform(k3, (N, Cl, Hl, Wl), jnp.float32,
                               minval=0.05, maxval=1.0)
    z_lik = jax.random.uniform(k4, (N, Cl, 2, 2), jnp.float32,
                               minval=0.05, maxval=1.0)
    latent_norm = jax.random.uniform(k5, (N, Cl, Hl, Wl), jnp.float32)

    output = {
        'likelihoods': {'y': y_lik, 'z': z_lik},
        'x_hat': x_hat,
        'latent_norm': latent_norm,
    }

    lmbda = 0.01
    out = spatial_distangle_loss(output, target, lmbda=lmbda,
                                 alpha=0.5, window_size=4)
    out = jax.block_until_ready(out)

    # Pure-JAX reference check
    num_pixels = N * H * W
    ref_y = jnp.sum(jnp.log(y_lik)) / (-math.log(2) * num_pixels)
    ref_z = jnp.sum(jnp.log(z_lik)) / (-math.log(2) * num_pixels)
    ref_mse = jnp.mean((x_hat - target) ** 2) * 255.0 ** 2
    ref_loss = lmbda * ref_mse + (ref_y + ref_z)

    np.testing.assert_allclose(np.asarray(out['y_bpp_loss']), np.asarray(ref_y), rtol=1e-5)
    np.testing.assert_allclose(np.asarray(out['z_bpp_loss']), np.asarray(ref_z), rtol=1e-5)
    np.testing.assert_allclose(np.asarray(out['bpp_loss']), np.asarray(ref_y + ref_z), rtol=1e-5)
    np.testing.assert_allclose(np.asarray(out['mse_loss']), np.asarray(ref_mse), rtol=1e-5)
    np.testing.assert_allclose(np.asarray(out['loss']), np.asarray(ref_loss), rtol=1e-5)

    print("KERNEL_OK")
</pallas_src>

<mosaic_0001>
module attributes {stable_mosaic.version = 11 : i64} {
  func.func @_sse_kernel(%arg0: i32, %arg1: i32, %arg2: memref<16x128xf32, #tpu.memory_space<vmem>>, %arg3: memref<16x128xf32, #tpu.memory_space<vmem>>, %arg4: memref<1x8x128xf32, #tpu.memory_space<vmem>>) attributes {dimension_semantics = [#tpu.dimension_semantics<parallel>, #tpu.dimension_semantics<arbitrary>], iteration_bounds = array<i64: 1, 1>, scalar_prefetch = 0 : i64, scratch_operands = 0 : i64, tpu.core_type = #tpu.core_type<tc>, window_params = [{transform_indices = @transform_0, window_bounds = array<i64: 16, 128>}, {transform_indices = @transform_1, window_bounds = array<i64: 16, 128>}, {transform_indices = @transform_2, window_bounds = array<i64: 1, 8, 128>}]} {
    %c0_i32 = arith.constant 0 : i32
    %0 = arith.cmpi eq, %arg1, %c0_i32 : i32
    %1 = arith.extui %0 : i1 to i32
    %c0_i32_0 = arith.constant 0 : i32
    %2 = arith.cmpi ne, %1, %c0_i32_0 : i32
    scf.if %2 {
      %cst_11 = arith.constant 0.000000e+00 : f32
      %27 = vector.broadcast %cst_11 : f32 to vector<1x8x128xf32>
      %c0_12 = arith.constant 0 : index
      %c0_13 = arith.constant 0 : index
      %c0_14 = arith.constant 0 : index
      %28 = vector.load %arg4[%c0_12, %c0_13, %c0_14] : memref<1x8x128xf32, #tpu.memory_space<vmem>>, vector<1x8x128xf32>
      tpu.vector_store %arg4[%c0_12, %c0_13, %c0_14], %27 {strides = array<i32>} : memref<1x8x128xf32, #tpu.memory_space<vmem>>, vector<1x8x128xf32>,
    } else {
    }
    %c1_i32 = arith.constant 1 : i32
    %3 = arith.muli %arg0, %c1_i32 : i32
    %4 = arith.addi %3, %arg1 : i32
    %c16_i32 = arith.constant 16 : i32
    %5 = arith.muli %4, %c16_i32 : i32
    %6 = tpu.iota {dimensions = array<i32: 0>} : vector<16x128xi32>
    %7 = vector.broadcast %5 : i32 to vector<16x128xi32>
    %8 = arith.addi %7, %6 : vector<16x128xi32>
    %9 = tpu.iota {dimensions = array<i32: 1>} : vector<16x128xi32>
    %c128_i32 = arith.constant 128 : i32
    %10 = vector.broadcast %c128_i32 : i32 to vector<16x128xi32>
    %11 = arith.muli %8, %10 : vector<16x128xi32>
    %12 = arith.addi %11, %9 : vector<16x128xi32>
    %c1536_i32 = arith.constant 1536 : i32
    %13 = vector.broadcast %c1536_i32 : i32 to vector<16x128xi32>
    %14 = arith.cmpi slt, %12, %13 : vector<16x128xi32>
    %c0 = arith.constant 0 : index
    %c0_1 = arith.constant 0 : index
    %15 = vector.load %arg2[%c0, %c0_1] : memref<16x128xf32, #tpu.memory_space<vmem>>, vector<16x128xf32>
    %c0_2 = arith.constant 0 : index
    %c0_3 = arith.constant 0 : index
    %16 = vector.load %arg3[%c0_2, %c0_3] : memref<16x128xf32, #tpu.memory_space<vmem>>, vector<16x128xf32>
    %17 = arith.subf %15, %16 : vector<16x128xf32>
    %cst = arith.constant 0.000000e+00 : f32
    %18 = vector.broadcast %cst : f32 to vector<16x128xf32>
    %19 = arith.select %14, %17, %18 : vector<16x128xi1>, vector<16x128xf32>
    %20 = arith.mulf %19, %19 : vector<16x128xf32>
    %21 = vector.shape_cast %20 : vector<16x128xf32> to vector<2x8x128xf32>
    %cst_4 = arith.constant dense<0.000000e+00> : vector<8x128xf32>
    %22 = vector.multi_reduction <add>, %21, %cst_4 [0] : vector<2x8x128xf32> to vector<8x128xf32>
    %23 = vector.shape_cast %22 : vector<8x128xf32> to vector<1x8x128xf32>
    %c0_5 = arith.constant 0 : index
    %c0_6 = arith.constant 0 : index
    %c0_7 = arith.constant 0 : index
    %24 = vector.load %arg4[%c0_5, %c0_6, %c0_7] : memref<1x8x128xf32, #tpu.memory_space<vmem>>, vector<1x8x128xf32>
    %25 = arith.addf %24, %23 : vector<1x8x128xf32>
    %c0_8 = arith.constant 0 : index
    %c0_9 = arith.constant 0 : index
    %c0_10 = arith.constant 0 : index
    %26 = vector.load %arg4[%c0_8, %c0_9, %c0_10] : memref<1x8x128xf32, #tpu.memory_space<vmem>>, vector<1x8x128xf32>
    tpu.vector_store %arg4[%c0_8, %c0_9, %c0_10], %25 {strides = array<i32>} : memref<1x8x128xf32, #tpu.memory_space<vmem>>, vector<1x8x128xf32>,
    return
  }
  func.func @transform_0(%arg0: i32, %arg1: i32) -> (i32, i32) {
    %c1_i32 = arith.constant 1 : i32
    %0 = arith.muli %arg0, %c1_i32 : i32
    %1 = arith.addi %0, %arg1 : i32
    %c0_i32 = arith.constant 0 : i32
    %2 = arith.minsi %1, %c0_i32 : i32
    %c0_i32_0 = arith.constant 0 : i32
    %c0_i32_1 = arith.constant 0 : i32
    return %2, %c0_i32_0 : i32, i32
  }
  func.func @transform_1(%arg0: i32, %arg1: i32) -> (i32, i32) {
    %c1_i32 = arith.constant 1 : i32
    %0 = arith.muli %arg0, %c1_i32 : i32
    %1 = arith.addi %0, %arg1 : i32
    %c0_i32 = arith.constant 0 : i32
    %2 = arith.minsi %1, %c0_i32 : i32
    %c0_i32_0 = arith.constant 0 : i32
    %c0_i32_1 = arith.constant 0 : i32
    return %2, %c0_i32_0 : i32, i32
  }
  func.func @transform_2(%arg0: i32, %arg1: i32) -> (i32, i32, i32) {
    %c0_i32 = arith.constant 0 : i32
    %c0_i32_0 = arith.constant 0 : i32
    %c0_i32_1 = arith.constant 0 : i32
    return %arg0, %c0_i32, %c0_i32_0 : i32, i32, i32
  }
}

</mosaic_0001>

<bundles_post_ra>
// kernel: tpu_custom_call.1
= control target key start
LH: loop header
LB: loop body
LE: loop exit
PB: predicated region body
PF: predicated region fallthrough
CT: control target
= control target key end

     0   :  { %7 = vsyncpa [#allocation3], 0  ;;  %s249_s0 = inlined_call_operand.hbm [shape: f32[16,128], index: 0, kind: input, shape index: {}]   ;;  %s250_s1 = inlined_call_operand.hbm [shape: f32[16,128], index: 1, kind: input, shape index: {}]   ;;  %s251_s2 = inlined_call_operand.hbm [shape: f32[1,8,128], index: 2, kind: output, shape index: {}]  }
   0x1   :  { %8 = vsyncpa [#allocation6], 0 }
   0x2   :  { %9 = vsyncpa [#allocation4], 0  ;;  %s193_s9 = smov [#allocation2]   ;;  %s121_s13 = scalar_lea.hbm %s249_s0, 256 }
   0x3   :  { %s21_s10 = sshll.u32 %s193_s9, 4  ;;  %p122_p0 = scmp.ne.s32.totalorder %s249_s0, %s121_s13  ;;  %s22_s10 = int_to_ptr.vmem [resolvable:$true] %s21_s10 }
   0x4   :  { %p125_p1 = scmp.lt.u32.totalorder %s121_s13, %s249_s0 }
   0x6   :  { %p127_p2 = pnand %p125_p1, %p122_p0 }
   0x8   :  { %130 = shalt.err (!%p127_p2)
}
   0x9   :  { %s131_s18 = scalar_lea.vmem %s22_s10, 256  ;;  %p136_p4 = scmp.lt.s32.totalorder %s22_s10, %s22_s10 }
   0xa   :  { %p132_p3 = scmp.ne.s32.totalorder %s22_s10, %s131_s18  ;;  %p137_p5 = scmp.lt.s32.totalorder %s131_s18, %s131_s18 }
   0xc   :  { %p138_p6 = por %p137_p5, %p136_p4 }
   0xe   :  { %p139_p7 = pnand %p138_p6, %p132_p3 }
  0x10   :  { %142 = shalt.err (!%p139_p7)
}
  0x11   :  { %s194_s19 = smov 128   ;;  %s195_s20 = smov 8  }
  0x12   :  { %27 = dma.hbm_to_vmem [thread:$0]  %s249_s0, 256, %s22_s10, [#allocation3], %s194_s19, %s194_s19, %s195_s20  }
  0x13   :  { %s196_s23 = smov [#allocation5]   ;;  %s143_s27 = scalar_lea.hbm %s250_s1, 256 }
  0x14   :  { %s39_s24 = sshll.u32 %s196_s23, 4  ;;  %p144_p8 = scmp.ne.s32.totalorder %s250_s1, %s143_s27  ;;  %s40_s24 = int_to_ptr.vmem [resolvable:$true] %s39_s24 }
  0x15   :  { %p147_p9 = scmp.lt.u32.totalorder %s143_s27, %s250_s1 }
  0x17   :  { %p149_p10 = pnand %p147_p9, %p144_p8 }
  0x19   :  { %152 = shalt.err (!%p149_p10)
}
  0x1a   :  { %s153_s4 = scalar_lea.vmem %s40_s24, 256  ;;  %p158_p12 = scmp.lt.s32.totalorder %s40_s24, %s40_s24 }
  0x1b   :  { %p154_p11 = scmp.ne.s32.totalorder %s40_s24, %s153_s4  ;;  %p159_p13 = scmp.lt.s32.totalorder %s153_s4, %s153_s4 }
  0x1d   :  { %p160_p0 = por %p159_p13, %p158_p12 }
  0x1f   :  { %p161_p1 = pnand %p160_p0, %p154_p11 }
  0x21   :  { %164 = shalt.err (!%p161_p1)
}
  0x22   :  { %45 = dma.hbm_to_vmem [thread:$0]  %s250_s1, 256, %s40_s24, [#allocation6], %s194_s19, %s194_s19, %s195_s20  }
  0x23   :  { %187 = dma.done.wait [#allocation3], 256  }
  0x24   :  { %188 = vsyncadd [#allocation3], 4294967040 }
  0x25   :  { %189 = dma.done.wait [#allocation6], 256  }
  0x26   :  { %190 = vsyncadd [#allocation6], 4294967040  ;;  %v67_v0 = vlaneseq  ;;  %v81_v7 = vld [vmem:[#allocation2] sm:$0xff]  ;;  %v82_v8 = vld [vmem:[#allocation2 + $0x8] sm:$0xff]  ;;  %s197_s1 = smov [#allocation7]  }
  0x27   :  { %v83_v9 = vld [vmem:[#allocation5] sm:$0xff]  ;;  %v84_v11 = vld [vmem:[#allocation5 + $0x8] sm:$0xff]  ;;  %s101_s6 = sshll.u32 %s197_s1, 4  ;;  %s102_s6 = int_to_ptr.vmem [resolvable:$true] %s101_s6 }
  0x28   :  { %v68_v1 = vshrl.u32 %v67_v0, 7  ;;  %v74_v2 = vand.u32 127, %v67_v0  ;;  %v85_v12 = vsub.f32 %v81_v7, %v83_v9  ;;  %v86_v13 = vsub.f32 %v82_v8, %v84_v11  ;;  %s165_s7 = scalar_lea.vmem %s102_s6, 128  ;;  %p170_p3 = scmp.lt.s32.totalorder %s102_s6, %s102_s6 }
  0x29   :  { %p166_p2 = scmp.ne.s32.totalorder %s102_s6, %s165_s7  ;;  %p171_p4 = scmp.lt.s32.totalorder %s165_s7, %s165_s7 }
  0x2a   :  { %v69_v3 = vadd.s32 8, %v68_v1  ;;  %v75_v4 = vmul.u32 128, %v68_v1 }
  0x2b   :  { %p172_p5 = por %p171_p4, %p170_p3 }
  0x2c   :  { %v76_v5 = vmul.u32 128, %v69_v3  ;;  %v77_v6 = vadd.s32 %v75_v4, %v74_v2 }
  0x2d   :  { %p173_p6 = pnand %p172_p5, %p166_p2 }
  0x2e   :  { %v78_v10 = vadd.s32 %v76_v5, %v74_v2  ;;  %vm79_vm0 = vcmp.lt.s32.totalorder %v77_v6, 1536 }
  0x2f   :  { %v87_v14 = vsel %vm79_vm0, %v85_v12, 0.0 }
  0x30   :  { %vm80_vm1 = vcmp.lt.s32.totalorder %v78_v10, 1536  ;;  %v89_v16 = vmul.f32 %v87_v14, %v87_v14 }
  0x31   :  { %v88_v15 = vsel %vm80_vm1, %v86_v13, 0.0 }
  0x32   :  { %v90_v17 = vmul.f32 %v88_v15, %v88_v15 }
  0x34   :  { %v91_v18 = vadd.f32 %v90_v17, %v89_v16 }
  0x36   :  { %94 = vst [vmem:[#allocation7] sm:$0xff] %v91_v18 }
  0x37   :  { %176 = shalt.err (!%p173_p6)
}
  0x38   :  { %s177_s10 = scalar_lea.hbm %s251_s2, 128 }
  0x39   :  { %p178_p7 = scmp.ne.s32.totalorder %s251_s2, %s177_s10  ;;  %p181_p8 = scmp.lt.u32.totalorder %s177_s10, %s251_s2 }
  0x3b   :  { %p183_p9 = pnand %p181_p8, %p178_p7 }
  0x3d   :  { %186 = shalt.err (!%p183_p9)
}
  0x3e   :  { %104 = dma.vmem_to_hbm [thread:$0]  %s102_s6, 128, %s251_s2, [#allocation4]  }
  0x3f   :  { %191 = dma.done.wait [#allocation4], 128  }
  0x40   :  { %192 = vsyncadd [#allocation4], 4294967168 }
  0x41   :  { %108 = vsyncpa [#allocation3], 1 }
  0x42   :  { %109 = vsyncpa [#allocation6], 1 }
  0x43   :  { %110 = vsyncpa [#allocation4], 1 }

</bundles_post_ra>
